<compile_context>
chip_gen: v6e
topology: v6e:2x2x1
jax: 0.10.0
libtpu: 0.0.40
codegen_flags: <defaults>
</compile_context>

<pallas_src>
import functools

import jax
import jax.numpy as jnp
from jax import lax
from jax.experimental import pallas as pl
from jax.experimental.pallas import tpu as pltpu

EPS = 1e-5
NEG_SLOPE = 0.01  # nn.LeakyReLU() default


def _lrelu(z):
    return jnp.where(z > 0, z, NEG_SLOPE * z)


def _round16(n):
    return ((n + 15) // 16) * 16


def _slab_layout(c):
    """Row offsets of each matrix inside the packed bf16 weight slab (lane width = 4*c)."""
    chw = 16 * c          # 4x4 spatial input, flattened per channel
    pc = 4 * c            # layer1 output: 2x2 positions x c channels
    o_t1 = 0                         # (chw, pc)  conv1 lowering (Toeplitz) matrix
    o_tm = o_t1 + chw                # (chw, pc)  broadcast-mean lowering (= T1 @ B)
    o_b = o_tm + chw                 # (pc,  pc)  avg-over-positions-and-broadcast
    o_w2 = o_b + _round16(pc)        # (pc,  c+1) conv2 + zero col (const-1 lane)
    o_w3 = o_w2 + _round16(pc)       # (c+1, c+1) fc1^T with b3 folded + const-1 passthrough
    o_w4 = o_w3 + _round16(c + 1)    # (c+1, n_out) fc2^T with b4 folded
    rows = o_w4 + _round16(c + 1)
    return (o_t1, o_tm, o_b, o_w2, o_w3, o_w4), rows


def latent_d_kernel(x_ref,      # (N, C*H*W) f32   flattened NCHW input
                    w_ref,      # (rows, P*C) bf16 packed matmul weights
                    aff_ref,    # (3, P*C)   f32   rows: gamma tiled, beta tiled, [b2|1|0..]
                    out_ref,    # (N, n_out) f32
                    *, c, n_out):
    (o_t1, o_tm, o_b, o_w2, o_w3, o_w4), _ = _slab_layout(c)
    chw, pc, ce = 16 * c, 4 * c, c + 1
    bf16, f32 = jnp.bfloat16, jnp.float32

    xb = x_ref[...].astype(bf16)                                              # (N, C*H*W)

    # --- layer1 conv + broadcast per-channel mean: two matmuls straight from x ---
    y1 = jnp.dot(xb, w_ref[o_t1:o_t1 + chw, :], preferred_element_type=f32)  # (N, P*C)
    mb = jnp.dot(xb, w_ref[o_tm:o_tm + chw, :], preferred_element_type=f32)  # (N, P*C) mean, already broadcast

    # --- InstanceNorm2d: biased variance over the P positions, on the idle MXU ---
    d = y1 - mb
    vb = jnp.dot((d * d).astype(bf16), w_ref[o_b:o_b + pc, :],
                 preferred_element_type=f32)                                  # (N, P*C) var, broadcast
    gamma_t = aff_ref[0:1, :]                                                 # (1, P*C) pre-tiled
    beta_t = aff_ref[1:2, :]
    b2e = aff_ref[2:3, 0:ce]                                                  # (1, C+1): [b2 | 1.0]
    yn = _lrelu(d * (lax.rsqrt(vb + EPS) * gamma_t) + beta_t)                 # (N, P*C), all f32 VPU/EUP

    # --- layer2 conv (2x2 -> 1x1) + bias + LeakyReLU; last lane becomes a constant 1 ---
    y2 = _lrelu(jnp.dot(yn.astype(bf16), w_ref[o_w2:o_w2 + pc, 0:ce],
                        preferred_element_type=f32) + b2e)                    # (N, C+1)

    # --- fc1 (+b3) + LeakyReLU, fc2 (+b4); biases folded via the constant-1 lane ---
    y3 = _lrelu(jnp.dot(y2.astype(bf16), w_ref[o_w3:o_w3 + ce, 0:ce],
                        preferred_element_type=f32))                          # (N, C+1)
    out_ref[...] = jnp.dot(y3.astype(bf16), w_ref[o_w4:o_w4 + ce, 0:n_out],
                           preferred_element_type=f32)                        # (N, n_out)


def pack_latent_d_params(params):
    """One-time repack of PyTorch-layout params into two kernel inputs:
    a bf16 matmul-weight slab and a tiny f32 pack for the elementwise constants."""
    W1, gamma, beta, W2, b2, W3, b3, W4, b4 = [jnp.asarray(p, jnp.float32) for p in params]
    C = W1.shape[0]
    n_out = W4.shape[0]
    H = Wsp = 4                      # latent_D needs flatten dim == n_in -> 4x4 input
    P, PC, CHW = 4, 4 * C, 16 * C
    assert PC >= C + 1 and PC >= n_out

    # conv1 as a lowering (Toeplitz) matrix: convolve the identity basis (exact —
    # one-hot inputs just pick out individual weights).
    eye = jnp.eye(CHW, dtype=jnp.float32).reshape(CHW, C, H, Wsp)
    yb = lax.conv_general_dilated(eye, W1, (2, 2), ((1, 1), (1, 1)),
                                  dimension_numbers=('NCHW', 'OIHW', 'NCHW'),
                                  precision=lax.Precision.HIGHEST)            # (CHW, C, 2, 2)
    t1 = yb.transpose(0, 2, 3, 1).reshape(CHW, PC)          # column = (oh*2+ow)*C + co

    # B: average a channel over its P positions and broadcast back to every position.
    ch = jnp.arange(PC) % C
    bmat = (ch[:, None] == ch[None, :]).astype(jnp.float32) / P               # (PC, PC)
    # Broadcast-mean lowering, built from the bf16-quantized T1 so y1 and its mean
    # share the same weight rounding.
    tq = t1.astype(jnp.bfloat16).astype(jnp.float32)
    tm = tq @ bmat                                                            # (CHW, PC)

    # conv2 as a matmul (row = (kh*2+kw)*C + ci, matching y1's lane layout); the extra
    # zero column + the trailing 1.0 in b2e manufacture a constant-1 lane after the
    # LeakyReLU, which lets b3/b4 be folded into the fc weights below.
    w2m = jnp.transpose(W2, (2, 3, 1, 0)).reshape(PC, C)
    w2e = jnp.concatenate([w2m, jnp.zeros((PC, 1), jnp.float32)], axis=1)     # (PC, C+1)
    w3e = (jnp.zeros((C + 1, C + 1), jnp.float32)
           .at[:C, :C].set(W3.T).at[C, :C].set(b3).at[C, C].set(1.0))
    w4e = jnp.zeros((C + 1, n_out), jnp.float32).at[:C, :].set(W4.T).at[C, :].set(b4)

    (o_t1, o_tm, o_b, o_w2, o_w3, o_w4), rows = _slab_layout(C)
    slab = jnp.zeros((rows, PC), jnp.float32)
    slab = slab.at[o_t1:o_t1 + CHW, :].set(tq)
    slab = slab.at[o_tm:o_tm + CHW, :].set(tm)
    slab = slab.at[o_b:o_b + PC, :].set(bmat)
    slab = slab.at[o_w2:o_w2 + PC, :C + 1].set(w2e)
    slab = slab.at[o_w3:o_w3 + C + 1, :C + 1].set(w3e)
    slab = slab.at[o_w4:o_w4 + C + 1, :n_out].set(w4e)
    wslab = slab.astype(jnp.bfloat16)                                         # (rows, PC) bf16

    affine = (jnp.zeros((3, PC), jnp.float32)
              .at[0, :].set(jnp.tile(gamma, P))
              .at[1, :].set(jnp.tile(beta, P))
              .at[2, :C].set(b2).at[2, C].set(1.0))                           # (3, PC) f32
    return wslab, affine


@functools.partial(jax.jit, static_argnames=("n_out",))
def latent_d_forward(x, wslab, affine, *, n_out):
    """x: (N, C, 4, 4) f32 NCHW; (wslab, affine) from pack_latent_d_params. -> (N, n_out)."""
    N, C, H, W = x.shape
    if H != 4 or W != 4:
        raise ValueError(
            "latent_D requires flatten dim == n_in, i.e. a 4x4 spatial input "
            f"(layer1 output 2x2); got {H}x{W}")
    x_flat = x.reshape(N, C * H * W)   # the only wrapper-side op (pure layout)

    kernel = functools.partial(latent_d_kernel, c=C, n_out=n_out)
    vmem = pl.BlockSpec(memory_space=pltpu.MemorySpace.VMEM)
    # Grid-less: at N=2 a grid only adds per-step overhead.  For large batches, add a
    # grid over N-blocks with compiler_params dimension_semantics=("parallel",).
    return pl.pallas_call(
        kernel,
        out_shape=jax.ShapeDtypeStruct((N, n_out), jnp.float32),
        in_specs=[vmem, vmem, vmem],
        out_specs=vmem,
    )(x_flat, wslab, affine)


def latent_d_reference(x, params):
    """Pure-JAX reference matching the PyTorch forward (kept at HIGHEST precision)."""
    W1, gamma, beta, W2, b2, W3, b3, W4, b4 = params
    N, C, H, W = x.shape
    hi = lax.Precision.HIGHEST
    dn = ('NCHW', 'OIHW', 'NCHW')

    y1 = lax.conv_general_dilated(x, W1, (2, 2), ((1, 1), (1, 1)),
                                  dimension_numbers=dn, precision=hi)
    m = jnp.mean(y1, axis=(2, 3), keepdims=True)
    v = jnp.mean((y1 - m) ** 2, axis=(2, 3), keepdims=True)
    y1 = (y1 - m) / jnp.sqrt(v + EPS)
    y1 = y1 * gamma[None, :, None, None] + beta[None, :, None, None]
    y1 = _lrelu(y1)

    y2 = lax.conv_general_dilated(y1, W2, (1, 1), 'VALID',
                                  dimension_numbers=dn, precision=hi)
    y2 = _lrelu(y2 + b2[None, :, None, None]).reshape(N, -1)

    y3 = _lrelu(jnp.dot(y2, W3.T, precision=hi) + b3)
    return jnp.dot(y3, W4.T, precision=hi) + b4


if __name__ == "__main__":
    N, C, H, W = 2, 16, 4, 4     # n_in = 16 (4x4 input -> flatten dim == n_in)
    N_OUT = 8

    keys = jax.random.split(jax.random.PRNGKey(0), 10)
    W1 = (jax.random.normal(keys[0], (C, C, 3, 3)) * 0.1).astype(jnp.float32)
    gamma = (1.0 + 0.1 * jax.random.normal(keys[1], (C,))).astype(jnp.float32)
    beta = (0.1 * jax.random.normal(keys[2], (C,))).astype(jnp.float32)
    W2 = (jax.random.normal(keys[3], (C, C, 2, 2)) * 0.1).astype(jnp.float32)
    b2 = (0.1 * jax.random.normal(keys[4], (C,))).astype(jnp.float32)
    W3 = (jax.random.normal(keys[5], (C, C)) * 0.1).astype(jnp.float32)
    b3 = (0.1 * jax.random.normal(keys[6], (C,))).astype(jnp.float32)
    W4 = (jax.random.normal(keys[7], (N_OUT, C)) * 0.1).astype(jnp.float32)
    b4 = (0.1 * jax.random.normal(keys[8], (N_OUT,))).astype(jnp.float32)
    x = jax.random.normal(keys[9], (N, C, H, W)).astype(jnp.float32)

    params = (W1, gamma, beta, W2, b2, W3, b3, W4, b4)
    wslab, affine = pack_latent_d_params(params)   # one-time pre-pack, off the per-call path

    out = latent_d_forward(x, wslab, affine, n_out=N_OUT)
    out = jax.block_until_ready(out)

    ref = jax.block_until_ready(latent_d_reference(x, params))
    assert out.shape == (N, N_OUT)
    # The whole kernel path runs on the bf16 MXU (weights pre-quantized to bf16 per the
    # perf review, including the InstanceNorm mean/var matmuls) while the reference is
    # f32 at HIGHEST precision, so compare at bf16-level tolerance.
    assert jnp.allclose(out, ref, atol=1e-2, rtol=1e-2), (out, ref)

    print("KERNEL_OK")
</pallas_src>

<mosaic_0001>
module attributes {stable_mosaic.version = 11 : i64} {
  func.func @latent_d_kernel(%arg0: memref<2x256xf32, #tpu.memory_space<vmem>>, %arg1: memref<704x64xbf16, #tpu.memory_space<vmem>>, %arg2: memref<3x64xf32, #tpu.memory_space<vmem>>, %arg3: memref<2x8xf32, #tpu.memory_space<vmem>>) attributes {dimension_semantics = [], scalar_prefetch = 0 : i64, scratch_operands = 0 : i64, tpu.core_type = #tpu.core_type<tc>} {
    %c0 = arith.constant 0 : index
    %c0_0 = arith.constant 0 : index
    %0 = vector.load %arg0[%c0, %c0_0] : memref<2x256xf32, #tpu.memory_space<vmem>>, vector<2x256xf32>
    %1 = arith.truncf %0 : vector<2x256xf32> to vector<2x256xbf16>
    %c0_1 = arith.constant 0 : index
    %c0_2 = arith.constant 0 : index
    %2 = vector.load %arg1[%c0_1, %c0_2] : memref<704x64xbf16, #tpu.memory_space<vmem>>, vector<256x64xbf16>
    %cst = arith.constant dense<0.000000e+00> : vector<2x64xf32>
    %3 = tpu.matmul %1, %2, %cst {dimension_numbers = #tpu.dot_dimension_numbers<[1], [0], [0], [1], [0, 0, 1, 1], [], []>} : vector<2x256xbf16>, vector<256x64xbf16>, vector<2x64xf32> -> vector<2x64xf32>
    %c256 = arith.constant 256 : index
    %c0_3 = arith.constant 0 : index
    %4 = vector.load %arg1[%c256, %c0_3] : memref<704x64xbf16, #tpu.memory_space<vmem>>, vector<256x64xbf16>
    %cst_4 = arith.constant dense<0.000000e+00> : vector<2x64xf32>
    %5 = tpu.matmul %1, %4, %cst_4 {dimension_numbers = #tpu.dot_dimension_numbers<[1], [0], [0], [1], [0, 0, 1, 1], [], []>} : vector<2x256xbf16>, vector<256x64xbf16>, vector<2x64xf32> -> vector<2x64xf32>
    %6 = arith.subf %3, %5 : vector<2x64xf32>
    %7 = arith.mulf %6, %6 : vector<2x64xf32>
    %8 = arith.truncf %7 : vector<2x64xf32> to vector<2x64xbf16>
    %c512 = arith.constant 512 : index
    %c0_5 = arith.constant 0 : index
    %9 = vector.load %arg1[%c512, %c0_5] : memref<704x64xbf16, #tpu.memory_space<vmem>>, vector<64x64xbf16>
    %cst_6 = arith.constant dense<0.000000e+00> : vector<2x64xf32>
    %10 = tpu.matmul %8, %9, %cst_6 {dimension_numbers = #tpu.dot_dimension_numbers<[1], [0], [0], [1], [0, 0, 1, 1], [], []>} : vector<2x64xbf16>, vector<64x64xbf16>, vector<2x64xf32> -> vector<2x64xf32>
    %c0_7 = arith.constant 0 : index
    %c0_8 = arith.constant 0 : index
    %11 = vector.load %arg2[%c0_7, %c0_8] : memref<3x64xf32, #tpu.memory_space<vmem>>, vector<1x64xf32>
    %c1 = arith.constant 1 : index
    %c0_9 = arith.constant 0 : index
    %12 = vector.load %arg2[%c1, %c0_9] : memref<3x64xf32, #tpu.memory_space<vmem>>, vector<1x64xf32>
    %c2 = arith.constant 2 : index
    %c0_10 = arith.constant 0 : index
    %13 = vector.load %arg2[%c2, %c0_10] : memref<3x64xf32, #tpu.memory_space<vmem>>, vector<1x17xf32>
    %cst_11 = arith.constant 9.99999974E-6 : f32
    %14 = vector.broadcast %cst_11 : f32 to vector<2x64xf32>
    %15 = arith.addf %10, %14 : vector<2x64xf32>
    %16 = math.rsqrt %15 : vector<2x64xf32>
    %17 = vector.broadcast %11 : vector<1x64xf32> to vector<2x64xf32>
    %18 = arith.mulf %16, %17 : vector<2x64xf32>
    %19 = arith.mulf %6, %18 : vector<2x64xf32>
    %20 = vector.broadcast %12 : vector<1x64xf32> to vector<2x64xf32>
    %21 = arith.addf %19, %20 : vector<2x64xf32>
    %cst_12 = arith.constant 0.000000e+00 : f32
    %22 = vector.broadcast %cst_12 : f32 to vector<2x64xf32>
    %23 = arith.cmpf ogt, %21, %22 : vector<2x64xf32>
    %cst_13 = arith.constant 0.00999999977 : f32
    %24 = vector.broadcast %cst_13 : f32 to vector<2x64xf32>
    %25 = arith.mulf %24, %21 : vector<2x64xf32>
    %26 = arith.select %23, %21, %25 : vector<2x64xi1>, vector<2x64xf32>
    %27 = arith.truncf %26 : vector<2x64xf32> to vector<2x64xbf16>
    %c576 = arith.constant 576 : index
    %c0_14 = arith.constant 0 : index
    %28 = vector.load %arg1[%c576, %c0_14] : memref<704x64xbf16, #tpu.memory_space<vmem>>, vector<64x17xbf16>
    %cst_15 = arith.constant dense<0.000000e+00> : vector<2x17xf32>
    %29 = tpu.matmul %27, %28, %cst_15 {dimension_numbers = #tpu.dot_dimension_numbers<[1], [0], [0], [1], [0, 0, 1, 1], [], []>} : vector<2x64xbf16>, vector<64x17xbf16>, vector<2x17xf32> -> vector<2x17xf32>
    %30 = vector.broadcast %13 : vector<1x17xf32> to vector<2x17xf32>
    %31 = arith.addf %29, %30 : vector<2x17xf32>
    %cst_16 = arith.constant 0.000000e+00 : f32
    %32 = vector.broadcast %cst_16 : f32 to vector<2x17xf32>
    %33 = arith.cmpf ogt, %31, %32 : vector<2x17xf32>
    %cst_17 = arith.constant 0.00999999977 : f32
    %34 = vector.broadcast %cst_17 : f32 to vector<2x17xf32>
    %35 = arith.mulf %34, %31 : vector<2x17xf32>
    %36 = arith.select %33, %31, %35 : vector<2x17xi1>, vector<2x17xf32>
    %37 = arith.truncf %36 : vector<2x17xf32> to vector<2x17xbf16>
    %c640 = arith.constant 640 : index
    %c0_18 = arith.constant 0 : index
    %38 = vector.load %arg1[%c640, %c0_18] : memref<704x64xbf16, #tpu.memory_space<vmem>>, vector<17x17xbf16>
    %cst_19 = arith.constant dense<0.000000e+00> : vector<2x17xf32>
    %39 = tpu.matmul %37, %38, %cst_19 {dimension_numbers = #tpu.dot_dimension_numbers<[1], [0], [0], [1], [0, 0, 1, 1], [], []>} : vector<2x17xbf16>, vector<17x17xbf16>, vector<2x17xf32> -> vector<2x17xf32>
    %cst_20 = arith.constant 0.000000e+00 : f32
    %40 = vector.broadcast %cst_20 : f32 to vector<2x17xf32>
    %41 = arith.cmpf ogt, %39, %40 : vector<2x17xf32>
    %cst_21 = arith.constant 0.00999999977 : f32
    %42 = vector.broadcast %cst_21 : f32 to vector<2x17xf32>
    %43 = arith.mulf %42, %39 : vector<2x17xf32>
    %44 = arith.select %41, %39, %43 : vector<2x17xi1>, vector<2x17xf32>
    %45 = arith.truncf %44 : vector<2x17xf32> to vector<2x17xbf16>
    %c672 = arith.constant 672 : index
    %c0_22 = arith.constant 0 : index
    %46 = vector.load %arg1[%c672, %c0_22] : memref<704x64xbf16, #tpu.memory_space<vmem>>, vector<17x8xbf16>
    %cst_23 = arith.constant dense<0.000000e+00> : vector<2x8xf32>
    %47 = tpu.matmul %45, %46, %cst_23 {dimension_numbers = #tpu.dot_dimension_numbers<[1], [0], [0], [1], [0, 0, 1, 1], [], []>} : vector<2x17xbf16>, vector<17x8xbf16>, vector<2x8xf32> -> vector<2x8xf32>
    %c0_24 = arith.constant 0 : index
    %c0_25 = arith.constant 0 : index
    %48 = vector.load %arg3[%c0_24, %c0_25] : memref<2x8xf32, #tpu.memory_space<vmem>>, vector<2x8xf32>
    tpu.vector_store %arg3[%c0_24, %c0_25], %47 {strides = array<i32>} : memref<2x8xf32, #tpu.memory_space<vmem>>, vector<2x8xf32>,
    return
  }
}

</mosaic_0001>

<bundles_post_ra>
// kernel: latent_d_forward.1
= control target key start
LH: loop header
LB: loop body
LE: loop exit
PB: predicated region body
PF: predicated region fallthrough
CT: control target
= control target key end

     0   :  { %v911_v34 = vmov 0.0   ;;  %s1104_s0 = inlined_call_operand.vmem [shape: f32[2,256], index: 0, kind: input, shape index: {}]   ;;  %s1105_s1 = inlined_call_operand.vmem [shape: bf16[704,64], index: 1, kind: input, shape index: {}]   ;;  %s1106_s2 = inlined_call_operand.vmem [shape: f32[3,64], index: 2, kind: input, shape index: {}]   ;;  %s1107_s3 = inlined_call_operand.hbm [shape: f32[2,8], index: 3, kind: output, shape index: {}]  }
   0x1   :  { %v843_v0 = vld [vmem:[%s1105_s1 + $0x78] sm:$0xff]   ;;  %v847_v4 = vld [vmem:[%s1105_s1 + $0x70] sm:$0xff]   ;;  %v851_v8 = vld [vmem:[%s1105_s1 + $0x68] sm:$0xff]  }
   0x2   :  { %v844_v1 = vld [vmem:[%s1105_s1 + $0xf8] sm:$0xff]   ;;  %739 = vmatprep.subr.bf16.mxu0 %v843_v0  ;;  %v848_v5 = vld [vmem:[%s1105_s1 + $0xf0] sm:$0xff]   ;;  %v852_v9 = vld [vmem:[%s1105_s1 + $0xe8] sm:$0xff]  }
   0x3   :  { %v845_v2 = vld [vmem:[%s1105_s1 + $0x38] sm:$0xff]   ;;  %761 = vmatprep.subr.bf16.mxu1 %v844_v1  ;;  %v849_v6 = vld [vmem:[%s1105_s1 + $0x30] sm:$0xff]   ;;  %v853_v10 = vld [vmem:[%s1105_s1 + $0x28] sm:$0xff]  }
   0x4   :  { %v846_v3 = vld [vmem:[%s1105_s1 + $0xb8] sm:$0xff]   ;;  %740 = vmatpush3.bf16.msra.mxu0 %v845_v2  ;;  %v850_v7 = vld [vmem:[%s1105_s1 + $0xb0] sm:$0xff]   ;;  %v854_v11 = vld [vmem:[%s1105_s1 + $0xa8] sm:$0xff]  }
   0x5   :  { %762 = vmatpush3.bf16.msra.mxu1 %v846_v3  ;;  %741 = vmatprep.subr.bf16.mxu0 %v847_v4  ;;  %v855_v12 = vld [vmem:[%s1105_s1 + $0x60] sm:$0xff]   ;;  %v859_v16 = vld [vmem:[%s1105_s1 + $0x58] sm:$0xff]   ;;  %v863_v20 = vld [vmem:[%s1105_s1 + $0x50] sm:$0xff]  }
   0x6   :  { %763 = vmatprep.subr.bf16.mxu1 %v848_v5  ;;  %v856_v13 = vld [vmem:[%s1105_s1 + $0xe0] sm:$0xff]   ;;  %v860_v17 = vld [vmem:[%s1105_s1 + $0xd8] sm:$0xff]   ;;  %v864_v21 = vld [vmem:[%s1105_s1 + $0xd0] sm:$0xff]  }
   0x7   :  { %v857_v14 = vld [vmem:[%s1105_s1 + $0x20] sm:$0xff]   ;;  %v861_v18 = vld [vmem:[%s1105_s1 + $0x18] sm:$0xff]   ;;  %v865_v22 = vld [vmem:[%s1105_s1 + $0x10] sm:$0xff]  }
   0x8   :  { %742 = vmatpush3.bf16.msra.mxu0 %v849_v6  ;;  %v858_v15 = vld [vmem:[%s1105_s1 + $0xa0] sm:$0xff]   ;;  %v862_v19 = vld [vmem:[%s1105_s1 + $0x98] sm:$0xff]   ;;  %v866_v23 = vld [vmem:[%s1105_s1 + $0x90] sm:$0xff]  }
   0x9   :  { %764 = vmatpush3.bf16.msra.mxu1 %v850_v7  ;;  %743 = vmatprep.subr.bf16.mxu0 %v851_v8  ;;  %v867_v24 = vld [vmem:[%s1105_s1 + $0x48] sm:$0xff]   ;;  %v871_v28 = vld [vmem:[%s1105_s1 + $0x40] sm:$0xff]   ;;  %v875_v35 = vld [vmem:[%s1105_s1 + $0x118] sm:$0xff]  }
   0xa   :  { %765 = vmatprep.subr.bf16.mxu1 %v852_v9  ;;  %v868_v25 = vld [vmem:[%s1105_s1 + $0xc8] sm:$0xff]   ;;  %v872_v29 = vld [vmem:[%s1105_s1 + $0xc0] sm:$0xff]  }
   0xb   :  { %v869_v26 = vld [vmem:[%s1105_s1 + $0x8] sm:$0xff]   ;;  %v873_v30 = vld [vmem:[%s1105_s1] sm:$0xff]  }
   0xc   :  { %744 = vmatpush3.bf16.msra.mxu0 %v853_v10  ;;  %v870_v27 = vld [vmem:[%s1105_s1 + $0x88] sm:$0xff]   ;;  %v874_v31 = vld [vmem:[%s1105_s1 + $0x80] sm:$0xff]  }
   0xd   :  { %766 = vmatpush3.bf16.msra.mxu1 %v854_v11  ;;  %745 = vmatprep.subr.bf16.mxu0 %v855_v12  ;;  %v687_v32 = vld.sshfl [vmem:[%s1104_s0] sm:$0x33 pattern:$0x76325410] }
   0xe   :  { %767 = vmatprep.subr.bf16.mxu1 %v856_v13  ;;  %v25_v33 = vcombine.high %v687_v32, %v687_v32  ;;  %v28_v36 = vpack.c.bf16 %v687_v32, %v687_v32 }
  0x10   :  { %746 = vmatpush3.bf16.msra.mxu0 %v857_v14  ;;  %v29_v37 = vpack.c.bf16 %v25_v33, %v25_v33 }
  0x11   :  { %768 = vmatpush3.bf16.msra.mxu1 %v858_v15  ;;  %747 = vmatprep.subr.bf16.mxu0 %v859_v16 }
  0x12   :  { %769 = vmatprep.subr.bf16.mxu1 %v860_v17  ;;  %190 = vmatprep.mubr.bf16.mxu0 %v29_v37 }
  0x13   :  { %358 = vmatprep.mubr.bf16.mxu1 %v29_v37 }
  0x14   :  { %748 = vmatpush3.bf16.msra.mxu0 %v861_v18 }
  0x15   :  { %770 = vmatpush3.bf16.msra.mxu1 %v862_v19  ;;  %749 = vmatprep.subr.bf16.mxu0 %v863_v20 }
  0x16   :  { %771 = vmatprep.subr.bf16.mxu1 %v864_v21 }
  0x18   :  { %750 = vmatpush3.bf16.msra.mxu0 %v865_v22 }
  0x19   :  { %772 = vmatpush3.bf16.msra.mxu1 %v866_v23  ;;  %751 = vmatprep.subr.bf16.mxu0 %v867_v24 }
  0x1a   :  { %773 = vmatprep.subr.bf16.mxu1 %v868_v25 }
  0x1c   :  { %752 = vmatpush3.bf16.msra.mxu0 %v869_v26 }
  0x1d   :  { %774 = vmatpush3.bf16.msra.mxu1 %v870_v27  ;;  %753 = vmatprep.subr.bf16.mxu0 %v871_v28 }
  0x1e   :  { %775 = vmatprep.subr.bf16.mxu1 %v872_v29 }
  0x20   :  { %754 = vmatpush3.bf16.msra.mxu0 %v873_v30 }
  0x21   :  { %776 = vmatpush3.bf16.msra.mxu1 %v874_v31  ;;  %799 = vmatprep.subr.bf16.mxu0 %v911_v34 }
  0x22   :  { %811 = vmatprep.subr.bf16.mxu1 %v911_v34 }
  0x23   :  { %191 = vmatmul.mubr.bf16.vlgmr.msra.gmra.mxu0 %v28_v36 }
  0x24   :  { %359 = vmatmul.mubr.bf16.vlgmr.msra.gmra.mxu1 %v28_v36  ;;  %800 = vmatpush3.bf16.msra.mxu0 %v875_v35 }
  0x25   :  { %801 = vmatprep.subr.bf16.mxu0 %v911_v34 }
  0x26   :  { %8 = vsyncpa [#allocation3], 0  ;;  %v876_v38 = vld [vmem:[%s1105_s1 + $0x110] sm:$0xff]   ;;  %v877_v39 = vld [vmem:[%s1105_s1 + $0x108] sm:$0xff]   ;;  %vm912_vm0 = vmmov 0   ;;  %vm404_vm1 = vcmask 523264  }
  0x27   :  { %v878_v40 = vld [vmem:[%s1105_s1 + $0x100] sm:$0xff]   ;;  %807 = vmatprep.mubr.msk.bf16.mxu0 %vm912_vm0, %v911_v34  ;;  %819 = vmatprep.mubr.msk.bf16.mxu1 %vm912_vm0, %v911_v34  ;;  %v879_v54 = vld [vmem:[%s1105_s1 + $0x138] sm:$0xff]   ;;  %v880_v55 = vld [vmem:[%s1105_s1 + $0x130] sm:$0xff]   ;;  %vm563_vm3 = vcmask 1040384   ;;  %v913_v9 = vmov 0   ;;  %vm559_vm5 = vcmask 138240  }
  0x28   :  { %802 = vmatpush3.bf16.msra.mxu0 %v876_v38  ;;  %812 = vmatpush3.bf16.msra.mxu1 %v879_v54  ;;  %v881_v56 = vld [vmem:[%s1105_s1 + $0x128] sm:$0xff]   ;;  %v882_v57 = vld [vmem:[%s1105_s1 + $0x120] sm:$0xff]   ;;  %v565_v10 = vsel %vm563_vm3, 65535, %v913_v9  ;;  %v885_v13 = vld [vmem:[%s1105_s1 + $0x158] ss:$0 sps:$4 sm:$0x11]  }
  0x29   :  { %803 = vmatprep.subr.bf16.mxu0 %v911_v34  ;;  %813 = vmatprep.subr.bf16.mxu1 %v911_v34  ;;  %v725_v63 = vld [vmem:[%s1106_s2] ss:$0 sm:$0xff]  ;;  %v726_v2 = vld [vmem:[%s1106_s2 + $0x1] ss:$0 sm:$0xff]  ;;  %v629_v14 = vand.u32 %v885_v13, %v565_v10  ;;  %v727_v15 = vld [vmem:[%s1106_s2 + $0x2] ss:$0 sm:$0xff] }
  0x2a   :  { %v883_v8 = vld [vmem:[%s1105_s1 + $0x148] ss:$0 sps:$4 sm:$0x11]   ;;  %v884_v12 = vld [vmem:[%s1105_s1 + $0x140] sm:$0xff]   ;;  %v886_v24 = vld [vmem:[%s1105_s1 + $0x150] sm:$0xff]   ;;  %s914_s2 = smov [#allocation2]  }
  0x2b   :  { %v567_v11 = vand.u32 %v883_v8, %v565_v10  ;;  %s679_s0 = sshll.u32 %s914_s2, 4  ;;  %vm671_vm7 = vcmask 58368   ;;  %s680_s0 = int_to_ptr.vmem [resolvable:$true] %s679_s0 }
  0x2c   :  { %804 = vmatpush3.bf16.msra.mxu0 %v877_v39  ;;  %814 = vmatpush3.bf16.msra.mxu1 %v880_v55  ;;  %s889_s26 = scalar_lea.vmem %s680_s0, 32  ;;  %p894_p1 = scmp.lt.s32.totalorder %s680_s0, %s680_s0 }
  0x2d   :  { %805 = vmatprep.subr.bf16.mxu0 %v911_v34  ;;  %815 = vmatprep.subr.bf16.mxu1 %v911_v34  ;;  %p890_p0 = scmp.ne.s32.totalorder %s680_s0, %s889_s26  ;;  %p895_p2 = scmp.lt.s32.totalorder %s889_s26, %s889_s26 }
  0x2f   :  { %p896_p3 = por %p895_p2, %p894_p1 }
  0x30   :  { %806 = vmatpush3.bf16.msra.mxu0 %v878_v40  ;;  %816 = vmatpush3.bf16.msra.mxu1 %v881_v56 }
  0x31   :  { %823 = vmatprep.subr.bf16.mxu0 %v911_v34  ;;  %817 = vmatprep.subr.bf16.mxu1 %v911_v34  ;;  %p897_p4 = pnand %p896_p3, %p890_p0 }
  0x34   :  { %818 = vmatpush3.bf16.msra.mxu1 %v882_v57 }
  0x35   :  { %831 = vmatprep.subr.bf16.mxu1 %v911_v34 }
  0xe3   :  { %v755_v41 = vpop.f32.mrf.mxu0 }
  0xe4   :  { %v777_v42 = vpop.f32.mrf.mxu1 }
  0xe5   :  { %v756_v43 = vpop.f32.mrf.mxu0 }
  0xe6   :  { %v778_v44 = vpop.f32.mrf.mxu1  ;;  %v757_v45 = vadd.f32 %v756_v43, %v755_v41 }
  0xe7   :  { %v779_v46 = vadd.f32 %v778_v44, %v777_v42  ;;  %v758_v47 = vpop.f32.mrf.mxu0 }
  0xe8   :  { %v780_v48 = vpop.f32.mrf.mxu1 }
  0xe9   :  { %v366_v49 = vsub.f32 %v757_v45, %v779_v46  ;;  %v759_v50 = vpop.f32.mrf.mxu0 }
  0xea   :  { %v781_v51 = vpop.f32.mrf.mxu1 }
  0xeb   :  { %v367_v52 = vmul.f32 %v366_v49, %v366_v49 }
  0xed   :  { %v368_v53 = vpack.c.bf16 %v367_v52, %v367_v52 }
  0xef   :  { %808 = vmatmul.mubr.msk.bf16.vlgmr.msra.gmra.mxu0 %vm404_vm1, %v368_v53 }
  0xf0   :  { %827 = vmatprep.mubr.msk.bf16.mxu0 %vm912_vm0, %v911_v34  ;;  %824 = vmatpush3.bf16.msra.mxu0 %v567_v11 }
  0xf1   :  { %825 = vmatprep.subr.bf16.mxu0 %v911_v34 }
  0xf4   :  { %826 = vmatpush3.bf16.msra.mxu0 %v884_v12 }
 0x1af   :  { %v442_v58 = vpop.f32.mrf.mxu0 }
 0x1b0   :  { %v443_v59 = vadd.f32 1e-05, %v442_v58 }
 0x1b1   :  { %v809_v60 = vpop.f32.mrf.mxu0 }
 0x1b2   :  { %887 = vrsqrt.f32 %v443_v59 }
 0x1b3   :  { %v445_v61 = vpop.f32.mrf.mxu0 }
 0x1b5   :  { %v810_v62 = vpop.f32.mrf.mxu0 }
 0x1bf   :  { %v888_v0 = vpop.eup %887 }
 0x1c0   :  { %v453_v1 = vmul.f32 %v888_v0, %v725_v63 }
 0x1c2   :  { %v454_v3 = vmul.f32 %v453_v1, %v366_v49 }
 0x1c4   :  { %v459_v4 = vadd.f32 %v726_v2, %v454_v3 }
 0x1c6   :  { %vm460_vm2 = vcmp.gt.f32.partialorder %v459_v4, 0.0  ;;  %v461_v5 = vmul.f32 0.01, %v459_v4 }
 0x1c8   :  { %v462_v6 = vsel %vm460_vm2, %v459_v4, %v461_v5 }
 0x1c9   :  { %v463_v7 = vpack.c.bf16 %v462_v6, %v462_v6 }
 0x1cb   :  { %820 = vmatmul.mubr.msk.bf16.vlgmr.msra.gmra.mxu1 %vm404_vm1, %v463_v7 }
 0x1cc   :  { %835 = vmatprep.mubr.msk.bf16.mxu1 %vm912_vm0, %v911_v34  ;;  %832 = vmatpush3.bf16.msra.mxu1 %v629_v14 }
 0x1cd   :  { %833 = vmatprep.subr.bf16.mxu1 %v911_v34 }
 0x1d0   :  { %834 = vmatpush3.bf16.msra.mxu1 %v886_v24 }
 0x28b   :  { %v537_v16 = vpop.f32.mrf.mxu1 }
 0x28c   :  { %v538_v17 = vadd.f32 %v727_v15, %v537_v16 }
 0x28d   :  { %v821_v18 = vpop.f32.mrf.mxu1 }
 0x28e   :  { %vm543_vm4 = vcmp.gt.f32.partialorder %v538_v17, 0.0  ;;  %v544_v19 = vmul.f32 0.01, %v538_v17 }
 0x28f   :  { %v540_v20 = vpop.f32.mrf.mxu1 }
 0x290   :  { %v545_v21 = vsel %vm543_vm4, %v538_v17, %v544_v19 }
 0x291   :  { %v546_v22 = vpack.c.bf16 %v545_v21, %v545_v21  ;;  %v822_v23 = vpop.f32.mrf.mxu1 }
 0x293   :  { %828 = vmatmul.mubr.msk.bf16.vlgmr.msra.gmra.mxu0 %vm559_vm5, %v546_v22 }
 0x353   :  { %v603_v25 = vpop.f32.mrf.mxu0 }
 0x354   :  { %vm609_vm6 = vcmp.gt.f32.partialorder %v603_v25, 0.0  ;;  %v610_v26 = vmul.f32 0.01, %v603_v25 }
 0x355   :  { %v829_v27 = vpop.f32.mrf.mxu0 }
 0x356   :  { %v611_v28 = vsel %vm609_vm6, %v603_v25, %v610_v26 }
 0x357   :  { %v612_v29 = vpack.c.bf16 %v611_v28, %v611_v28  ;;  %v606_v30 = vpop.f32.mrf.mxu0 }
 0x359   :  { %v830_v31 = vpop.f32.mrf.mxu0  ;;  %836 = vmatmul.mubr.msk.bf16.vlgmr.msra.gmra.mxu1 %vm559_vm5, %v612_v29 }
 0x419   :  { %v665_v32 = vpop.f32.mrf.mxu1 }
 0x41a   :  { %672 = vst.msk [vmem:[#allocation2] sm:$0x3] %vm671_vm7, %v665_v32 }
 0x41b   :  { %v837_v33 = vpop.f32.mrf.mxu1 }
 0x41c   :  { %900 = shalt.err (!%p897_p4)
}
 0x41d   :  { %682 = dma.vmem_to_hbm [thread:$0]  %s680_s0, 32, %s1107_s3, [#allocation3]   ;;  %v668_v34 = vpop.f32.mrf.mxu1 }
 0x41f   :  { %v838_v35 = vpop.f32.mrf.mxu1 }
 0x420   :  { %909 = dma.done.wait [#allocation3], 32  }
 0x421   :  { %910 = vsyncadd [#allocation3], 4294967264 }
 0x422   :  { %686 = vsyncpa [#allocation3], 1 }

</bundles_post_ra>
